<compile_context>
chip_gen: v6e
topology: v6e:2x2x1
jax: 0.10.0
libtpu: 0.0.40
codegen_flags: <defaults>
</compile_context>

<pallas_src>
import jax
import jax.numpy as jnp
from jax.experimental import pallas as pl
from jax.experimental.pallas import tpu as pltpu

_MIB = 1024 * 1024
_HAS_BUFFERED = hasattr(pl, "Buffered")


def _round_up(a: int, b: int) -> int:
    return (a + b - 1) // b * b


def _default_vmem_budget_bytes() -> int:
    """Per-generation VMEM budget: physical capacity minus headroom.

    ~112 MiB on v5e/v6e (128 MiB physical), ~48 MiB on v7x (64 MiB physical).
    """
    try:
        cap = int(pltpu.get_tpu_info().vmem_capacity_bytes)
    except Exception:
        cap = 64 * _MIB  # conservative (v7x-sized) fallback
    return max(32 * _MIB, min(cap - 16 * _MIB, 112 * _MIB))


def _pick_tm(M: int, want: int) -> int:
    """Row tile: multiple of 16 (bf16 sublane packing), capped at padded M,
    and split so the 'parallel' row axis has >=2 tiles when there is enough
    work (keeps both v7x TensorCores busy; harmless on 1-TC chips)."""
    gran = 16
    tm = min(int(want), _round_up(M, gran))
    tm = max(gran, _round_up(tm, gran))
    if _round_up(M, tm) == tm and M > 2 * gran:
        tm = max(gran, _round_up((M + 1) // 2, gran))
    return tm


# ---------------------------------------------------------------------------
# Path A: weight-resident fused kernel (small / medium vocab).
# ---------------------------------------------------------------------------
def _fused_proj_logsoftmax_kernel(x_ref, w_ref, b_ref, o_ref):
    # x: (tm, d_model) bf16, w: (d_model, vocab) bf16, b: (1, vocab) f32.
    logits = (
        jnp.dot(x_ref[...], w_ref[...], preferred_element_type=jnp.float32)
        + b_ref[...]
    )
    m = jnp.max(logits, axis=-1, keepdims=True)
    shifted = logits - m
    lse = jnp.log(jnp.sum(jnp.exp(shifted), axis=-1, keepdims=True))
    o_ref[...] = (shifted - lse).astype(o_ref.dtype)


# ---------------------------------------------------------------------------
# Path B, pass 1: vocab-tiled projection + online logsumexp (large vocab).
# ---------------------------------------------------------------------------
def _proj_online_lse_kernel(x_ref, w_ref, b_ref, logits_ref, lse_ref, m_sc, l_sc):
    v = pl.program_id(1)

    @pl.when(v == 0)
    def _():
        m_sc[...] = jnp.full_like(m_sc, -jnp.inf)
        l_sc[...] = jnp.zeros_like(l_sc)

    logits = (
        jnp.dot(x_ref[...], w_ref[...], preferred_element_type=jnp.float32)
        + b_ref[...]
    )
    logits_ref[...] = logits.astype(logits_ref.dtype)  # bf16 store, f32 math below

    # Online (flash-style) running max / rescaled sum-exp, all in f32.
    m_prev = m_sc[...]
    m_new = jnp.maximum(m_prev, jnp.max(logits, axis=-1, keepdims=True))
    alpha = jnp.exp(m_prev - m_new)
    l_sc[...] = alpha * l_sc[...] + jnp.sum(
        jnp.exp(logits - m_new), axis=-1, keepdims=True
    )
    m_sc[...] = m_new

    @pl.when(v == pl.num_programs(1) - 1)
    def _():
        lse_ref[...] = m_sc[...] + jnp.log(l_sc[...])


# ---------------------------------------------------------------------------
# Path B, pass 2: normalize the stored logits with the row logsumexp.
# ---------------------------------------------------------------------------
def _normalize_kernel(logits_ref, lse_ref, o_ref):
    o_ref[...] = (logits_ref[...] - lse_ref[...]).astype(o_ref.dtype)


def projection_layer(x, weight, bias, *, tm=None, tv=None,
                     logits_dtype=jnp.bfloat16, vmem_budget_bytes=None):
    """Fused Linear(d_model -> vocab) + log_softmax(axis=-1).

    x: (B, S, d_model); weight: (d_model, vocab) (transposed relative to
    torch nn.Linear's (vocab, d_model)); bias: (vocab,).
    Returns (B, S, vocab) log-probabilities in x.dtype.

    tm: row tile (None -> 256 for the fused path, 512 for the vocab-tiled path).
    tv: vocab tile; None -> fused path if it fits VMEM, else an adaptive tile.
    logits_dtype: dtype of the Path-B intermediate logits slab (bf16 default).
    vmem_budget_bytes: None -> per-generation default from get_tpu_info().
    """
    B, S, d_model = x.shape
    vocab = weight.shape[1]
    out_dtype = x.dtype
    out_itemsize = jnp.dtype(out_dtype).itemsize
    lg_itemsize = jnp.dtype(logits_dtype).itemsize
    if vmem_budget_bytes is None:
        vmem_budget_bytes = _default_vmem_budget_bytes()

    # bf16 MXU operands, f32 accumulation; bias stays f32.  Skip the casts if
    # the caller already holds bf16/f32 parameters (cast once at init time).
    x2 = x.reshape(B * S, d_model).astype(jnp.bfloat16)
    w = weight if weight.dtype == jnp.bfloat16 else weight.astype(jnp.bfloat16)
    b2 = (bias if bias.dtype == jnp.float32 else bias.astype(jnp.float32)).reshape(1, vocab)

    M = B * S

    # ----------------------------------------------------------------------
    # Path A: one fused kernel, full (lane-dense) vocab per output block.
    # ----------------------------------------------------------------------
    tm_a = _pick_tm(M, 256 if tm is None else tm)

    def _fused_fits(single_buffer_weights: bool) -> bool:
        wb = 1 if single_buffer_weights else 2
        byt = 2 * tm_a * d_model * 2                 # bf16 x tile, double-buffered
        byt += wb * d_model * vocab * 2              # bf16 weight
        byt += wb * _round_up(vocab, 128) * 4        # f32 bias
        byt += 2 * tm_a * vocab * out_itemsize       # output tile, double-buffered
        byt += 2 * tm_a * vocab * 4                  # in-kernel f32 logits / exp temps
        return byt <= vmem_budget_bytes

    def _run_fused(xp, Mp, single_buffer_weights: bool):
        if single_buffer_weights:
            w_spec = pl.BlockSpec((d_model, vocab), lambda i: (0, 0),
                                  pipeline_mode=pl.Buffered(1))
            b_spec = pl.BlockSpec((1, vocab), lambda i: (0, 0),
                                  pipeline_mode=pl.Buffered(1))
        else:
            w_spec = pl.BlockSpec((d_model, vocab), lambda i: (0, 0))
            b_spec = pl.BlockSpec((1, vocab), lambda i: (0, 0))
        return pl.pallas_call(
            _fused_proj_logsoftmax_kernel,
            out_shape=jax.ShapeDtypeStruct((Mp, vocab), out_dtype),
            grid_spec=pltpu.PrefetchScalarGridSpec(
                num_scalar_prefetch=0,
                grid=(Mp // tm_a,),
                in_specs=[pl.BlockSpec((tm_a, d_model), lambda i: (i, 0)),
                          w_spec, b_spec],
                out_specs=pl.BlockSpec((tm_a, vocab), lambda i: (i, 0)),
            ),
            compiler_params=pltpu.CompilerParams(
                dimension_semantics=("parallel",),
                vmem_limit_bytes=vmem_budget_bytes,
            ),
            cost_estimate=pl.CostEstimate(
                flops=2 * Mp * d_model * vocab,
                transcendentals=Mp * vocab,
                bytes_accessed=(Mp * d_model * 2 + d_model * vocab * 2
                                + vocab * 4 + Mp * vocab * out_itemsize),
            ),
        )(xp, w, b2)

    force_fused = tv is not None and tv >= vocab
    want_fused = force_fused or (tv is None and _fused_fits(_HAS_BUFFERED))

    if want_fused:
        Mp = _round_up(M, tm_a)
        xp = x2 if Mp == M else jnp.pad(x2, ((0, Mp - M), (0, 0)))  # zero rows, sliced off
        last_err = None
        for single in ([True, False] if _HAS_BUFFERED else [False]):
            # Don't retry double-buffered if that was exactly what didn't fit.
            if not single and not force_fused and not _fused_fits(False):
                break
            try:
                out = _run_fused(xp, Mp, single)
                return out[:M].reshape(B, S, vocab)
            except Exception as e:  # e.g. Buffered(1) unsupported on this jax
                last_err = e
                continue
        if force_fused and last_err is not None:
            raise last_err
        # otherwise fall through to the vocab-tiled path

    # ----------------------------------------------------------------------
    # Path B: vocab-tiled online logsumexp + normalization pass.
    # ----------------------------------------------------------------------
    tm_b = _pick_tm(M, 512 if tm is None else tm)

    def _step_bytes(tm_, tv_):
        byt = 2 * tm_ * d_model * 2            # bf16 x tile (double-buffered)
        byt += 2 * d_model * tv_ * 2           # bf16 weight tile
        byt += 2 * tv_ * 4                     # f32 bias tile
        byt += 2 * tm_ * tv_ * lg_itemsize     # logits output tile
        byt += 4 * tm_ * 4                     # lse output + running max/sum scratch
        byt += 2 * tm_ * tv_ * 4               # in-kernel f32 logits / exp temps
        return byt

    if tv is None:
        tv = 2048                              # v5e/v6e default; shrinks for v7x VMEM
        while tv > 256 and _step_bytes(tm_b, tv) > vmem_budget_bytes:
            tv //= 2
    # 256-aligned vocab tiles keep the 2x256^2 MXU (v6e/v7x) fully fed; also a
    # multiple of 128 for v5e.
    tv = max(256, min(_round_up(tv, 256), _round_up(vocab, 256)))
    while tm_b > 64 and _step_bytes(tm_b, tv) > vmem_budget_bytes:
        tm_b = max(64, _round_up(tm_b // 2, 16))

    Mp = _round_up(M, tm_b)
    xp = x2 if Mp == M else jnp.pad(x2, ((0, Mp - M), (0, 0)))

    Vp = _round_up(vocab, tv)
    wp, bp = w, b2
    if Vp != vocab:
        wp = jnp.pad(w, ((0, 0), (0, Vp - vocab)))
        # Padded columns get a hugely negative bias so they vanish from the
        # row logsumexp. -1e30 is finite in f32/bf16; the padded output
        # columns are sliced off below, so even a f16 out_dtype would only
        # ever see -inf in discarded columns.
        bp = jnp.pad(b2, ((0, 0), (0, Vp - vocab)), constant_values=-1e30)

    grid = (Mp // tm_b, Vp // tv)

    logits, lse = pl.pallas_call(
        _proj_online_lse_kernel,
        out_shape=(
            jax.ShapeDtypeStruct((Mp, Vp), logits_dtype),
            jax.ShapeDtypeStruct((Mp, 1), jnp.float32),
        ),
        grid_spec=pltpu.PrefetchScalarGridSpec(
            num_scalar_prefetch=0,
            grid=grid,
            in_specs=[
                pl.BlockSpec((tm_b, d_model), lambda i, v: (i, 0)),
                pl.BlockSpec((d_model, tv), lambda i, v: (0, v)),
                pl.BlockSpec((1, tv), lambda i, v: (0, v)),
            ],
            out_specs=[
                pl.BlockSpec((tm_b, tv), lambda i, v: (i, v)),
                pl.BlockSpec((tm_b, 1), lambda i, v: (i, 0)),
            ],
            scratch_shapes=[
                pltpu.VMEM((tm_b, 1), jnp.float32),  # running max
                pltpu.VMEM((tm_b, 1), jnp.float32),  # running sum-exp
            ],
        ),
        compiler_params=pltpu.CompilerParams(
            dimension_semantics=("parallel", "arbitrary"),
            vmem_limit_bytes=vmem_budget_bytes,
        ),
        cost_estimate=pl.CostEstimate(
            flops=2 * Mp * d_model * Vp,
            transcendentals=Mp * Vp,
            bytes_accessed=(Mp * d_model * 2
                            + (Mp // tm_b) * d_model * Vp * 2
                            + Vp * 4 + Mp * Vp * lg_itemsize + Mp * 4),
        ),
    )(xp, wp, bp)

    # Normalize pass: pure bandwidth, so use the fattest lane-dense vocab tile
    # that fits (decoupled from pass-1 tv) and alias the logits buffer in
    # place when dtypes allow.
    per_col = 2 * tm_b * (lg_itemsize + out_itemsize)
    cap_cols = max(256, (vmem_budget_bytes // 2) // max(per_col, 1))
    n256 = Vp // 256
    tv_norm = 256
    for d in range(1, n256 + 1):
        if n256 % d == 0 and d * 256 <= cap_cols:
            tv_norm = d * 256

    io_aliases = ({0: 0} if jnp.dtype(out_dtype) == jnp.dtype(logits_dtype) else {})

    out = pl.pallas_call(
        _normalize_kernel,
        out_shape=jax.ShapeDtypeStruct((Mp, Vp), out_dtype),
        grid_spec=pltpu.PrefetchScalarGridSpec(
            num_scalar_prefetch=0,
            grid=(Mp // tm_b, Vp // tv_norm),
            in_specs=[
                pl.BlockSpec((tm_b, tv_norm), lambda i, v: (i, v)),
                pl.BlockSpec((tm_b, 1), lambda i, v: (i, 0)),
            ],
            out_specs=pl.BlockSpec((tm_b, tv_norm), lambda i, v: (i, v)),
        ),
        compiler_params=pltpu.CompilerParams(
            dimension_semantics=("parallel", "parallel"),
            vmem_limit_bytes=vmem_budget_bytes,
        ),
        input_output_aliases=io_aliases,
        cost_estimate=pl.CostEstimate(
            flops=Mp * Vp,
            transcendentals=0,
            bytes_accessed=Mp * Vp * lg_itemsize + Mp * Vp * out_itemsize + Mp * 4,
        ),
    )(logits, lse)

    return out[:M, :vocab].reshape(B, S, vocab)


if __name__ == "__main__":
    # Small shapes consistent with the module's forward:
    #   x: (Batch=2, Seq_len=8, d_model=64) -> out: (2, 8, vocab_size=512)
    B, S, d_model, vocab_size = 2, 8, 64, 512

    key = jax.random.PRNGKey(0)
    kx, kw, kb = jax.random.split(key, 3)

    x = jax.random.normal(kx, (B, S, d_model), dtype=jnp.float32)
    # Deterministic nn.Linear-style init (uniform +/- 1/sqrt(d_model)); weight
    # stored transposed relative to PyTorch's (vocab, d_model).
    bound = 1.0 / (d_model ** 0.5)
    weight = jax.random.uniform(
        kw, (d_model, vocab_size), minval=-bound, maxval=bound, dtype=jnp.float32
    )
    bias = jax.random.uniform(
        kb, (vocab_size,), minval=-bound, maxval=bound, dtype=jnp.float32
    )
    # Cast the parameters once at "init time" (per review: avoid a per-call
    # HBM-wide cast in the wrapper).
    weight_bf16 = weight.astype(jnp.bfloat16)
    bias_f32 = bias.astype(jnp.float32)

    # Path A: weight-resident fused kernel (auto-selected for these shapes).
    out_fused = jax.block_until_ready(projection_layer(x, weight_bf16, bias_f32))
    # Path B: vocab-tiled online-logsumexp path, forced via a small vocab tile.
    out_tiled = jax.block_until_ready(
        projection_layer(x, weight_bf16, bias_f32, tv=256))
    # Path B again with a bf16 input so out_dtype == logits_dtype and the
    # normalize pass exercises input_output_aliases (in-place logits rewrite).
    out_bf16 = jax.block_until_ready(
        projection_layer(x.astype(jnp.bfloat16), weight_bf16, bias_f32, tv=256))

    assert out_fused.shape == (B, S, vocab_size)
    assert out_tiled.shape == (B, S, vocab_size)
    assert out_bf16.shape == (B, S, vocab_size)

    # Reference matched to the kernel's bf16-operand / f32-accumulate matmul.
    logits_bf16 = jnp.einsum(
        "bsd,dv->bsv",
        x.astype(jnp.bfloat16),
        weight_bf16,
        preferred_element_type=jnp.float32,
    ) + bias_f32
    ref_bf16 = jax.nn.log_softmax(logits_bf16, axis=-1)
    # Full-precision reference (the module's exact f32 math).
    ref_f32 = jax.nn.log_softmax(
        jnp.einsum("bsd,dv->bsv", x, weight) + bias, axis=-1
    )

    assert jnp.allclose(out_fused, ref_bf16, atol=2e-3, rtol=2e-3), "fused vs bf16 ref"
    assert jnp.allclose(out_fused, ref_f32, atol=5e-2, rtol=5e-2), "fused vs f32 ref"
    # Path B stores the intermediate logits slab in bf16, so allow bf16
    # rounding slack on the tiled results.
    assert jnp.allclose(out_tiled, ref_bf16, atol=3e-2, rtol=3e-2), "tiled vs bf16 ref"
    assert jnp.allclose(out_fused, out_tiled, atol=3e-2, rtol=3e-2), "fused vs tiled"
    assert jnp.allclose(out_bf16.astype(jnp.float32), ref_bf16,
                        atol=6e-2, rtol=3e-2), "tiled bf16-out vs bf16 ref"

    print("KERNEL_OK")
</pallas_src>

<mosaic_0001>
module attributes {stable_mosaic.version = 11 : i64} {
  func.func @_fused_proj_logsoftmax_kernel(%arg0: i32, %arg1: memref<16x64xbf16, #tpu.memory_space<vmem>>, %arg2: memref<64x512xbf16, #tpu.memory_space<vmem>>, %arg3: memref<1x512xf32, #tpu.memory_space<vmem>>, %arg4: memref<16x512xf32, #tpu.memory_space<vmem>>) attributes {dimension_semantics = [#tpu.dimension_semantics<parallel>], iteration_bounds = array<i64: 1>, scalar_prefetch = 0 : i64, scratch_operands = 0 : i64, tpu.core_type = #tpu.core_type<tc>, window_params = [{transform_indices = @transform_0, window_bounds = array<i64: 16, 64>}, {pipeline_mode = #tpu.pipeline_mode<synchronous>, transform_indices = @transform_1, window_bounds = array<i64: 64, 512>}, {pipeline_mode = #tpu.pipeline_mode<synchronous>, transform_indices = @transform_2, window_bounds = array<i64: 1, 512>}, {transform_indices = @transform_3, window_bounds = array<i64: 16, 512>}]} {
    %c0 = arith.constant 0 : index
    %c0_0 = arith.constant 0 : index
    %0 = vector.load %arg1[%c0, %c0_0] : memref<16x64xbf16, #tpu.memory_space<vmem>>, vector<16x64xbf16>
    %c0_1 = arith.constant 0 : index
    %c0_2 = arith.constant 0 : index
    %1 = vector.load %arg2[%c0_1, %c0_2] : memref<64x512xbf16, #tpu.memory_space<vmem>>, vector<64x512xbf16>
    %cst = arith.constant dense<0.000000e+00> : vector<16x512xf32>
    %2 = tpu.matmul %0, %1, %cst {dimension_numbers = #tpu.dot_dimension_numbers<[1], [0], [0], [1], [0, 0, 1, 1], [], []>} : vector<16x64xbf16>, vector<64x512xbf16>, vector<16x512xf32> -> vector<16x512xf32>
    %c0_3 = arith.constant 0 : index
    %c0_4 = arith.constant 0 : index
    %3 = vector.load %arg3[%c0_3, %c0_4] : memref<1x512xf32, #tpu.memory_space<vmem>>, vector<1x512xf32>
    %4 = vector.broadcast %3 : vector<1x512xf32> to vector<16x512xf32>
    %5 = arith.addf %2, %4 : vector<16x512xf32>
    %cst_5 = arith.constant dense<0xFF800000> : vector<16xf32>
    %6 = vector.multi_reduction <maximumf>, %5, %cst_5 [1] : vector<16x512xf32> to vector<16xf32>
    %7 = vector.shape_cast %6 : vector<16xf32> to vector<16x1xf32>
    %8 = vector.broadcast %7 : vector<16x1xf32> to vector<16x512xf32>
    %9 = arith.subf %5, %8 : vector<16x512xf32>
    %10 = math.exp %9 : vector<16x512xf32>
    %cst_6 = arith.constant dense<0.000000e+00> : vector<16xf32>
    %11 = vector.multi_reduction <add>, %10, %cst_6 [1] : vector<16x512xf32> to vector<16xf32>
    %12 = vector.shape_cast %11 : vector<16xf32> to vector<16x1xf32>
    %13 = math.log %12 : vector<16x1xf32>
    %14 = vector.broadcast %13 : vector<16x1xf32> to vector<16x512xf32>
    %15 = arith.subf %9, %14 : vector<16x512xf32>
    %c0_7 = arith.constant 0 : index
    %c0_8 = arith.constant 0 : index
    %16 = vector.load %arg4[%c0_7, %c0_8] : memref<16x512xf32, #tpu.memory_space<vmem>>, vector<16x512xf32>
    tpu.vector_store %arg4[%c0_7, %c0_8], %15 {strides = array<i32>} : memref<16x512xf32, #tpu.memory_space<vmem>>, vector<16x512xf32>,
    return
  }
  func.func @transform_0(%arg0: i32) -> (i32, i32) {
    %c0_i32 = arith.constant 0 : i32
    %c0_i32_0 = arith.constant 0 : i32
    return %arg0, %c0_i32 : i32, i32
  }
  func.func @transform_1(%arg0: i32) -> (i32, i32) {
    %c0_i32 = arith.constant 0 : i32
    %c0_i32_0 = arith.constant 0 : i32
    %c0_i32_1 = arith.constant 0 : i32
    return %c0_i32, %c0_i32_0 : i32, i32
  }
  func.func @transform_2(%arg0: i32) -> (i32, i32) {
    %c0_i32 = arith.constant 0 : i32
    %c0_i32_0 = arith.constant 0 : i32
    %c0_i32_1 = arith.constant 0 : i32
    return %c0_i32, %c0_i32_0 : i32, i32
  }
  func.func @transform_3(%arg0: i32) -> (i32, i32) {
    %c0_i32 = arith.constant 0 : i32
    %c0_i32_0 = arith.constant 0 : i32
    return %arg0, %c0_i32 : i32, i32
  }
}

module attributes {stable_mosaic.version = 11 : i64} {
  func.func @_fused_proj_logsoftmax_kernel(%arg0: i32, %arg1: memref<16x64xbf16, #tpu.memory_space<vmem>>, %arg2: memref<64x512xbf16, #tpu.memory_space<vmem>>, %arg3: memref<1x512xf32, #tpu.memory_space<vmem>>, %arg4: memref<16x512xf32, #tpu.memory_space<vmem>>) attributes {dimension_semantics = [#tpu.dimension_semantics<parallel>], iteration_bounds = array<i64: 1>, scalar_prefetch = 0 : i64, scratch_operands = 0 : i64, tpu.core_type = #tpu.core_type<tc>, window_params = [{transform_indices = @transform_0, window_bounds = array<i64: 16, 64>}, {pipeline_mode = #tpu.pipeline_mode<synchronous>, transform_indices = @transform_1, window_bounds = array<i64: 64, 512>}, {pipeline_mode = #tpu.pipeline_mode<synchronous>, transform_indices = @transform_2, window_bounds = array<i64: 1, 512>}, {transform_indices = @transform_3, window_bounds = array<i64: 16, 512>}]} {
    %c0 = arith.constant 0 : index
    %c0_0 = arith.constant 0 : index
    %0 = vector.load %arg1[%c0, %c0_0] : memref<16x64xbf16, #tpu.memory_space<vmem>>, vector<16x64xbf16>
    %c0_1 = arith.constant 0 : index
    %c0_2 = arith.constant 0 : index
    %1 = vector.load %arg2[%c0_1, %c0_2] : memref<64x512xbf16, #tpu.memory_space<vmem>>, vector<64x512xbf16>
    %cst = arith.constant dense<0.000000e+00> : vector<16x512xf32>
    %2 = tpu.matmul %0, %1, %cst {dimension_numbers = #tpu.dot_dimension_numbers<[1], [0], [0], [1], [0, 0, 1, 1], [], []>} : vector<16x64xbf16>, vector<64x512xbf16>, vector<16x512xf32> -> vector<16x512xf32>
    %c0_3 = arith.constant 0 : index
    %c0_4 = arith.constant 0 : index
    %3 = vector.load %arg3[%c0_3, %c0_4] : memref<1x512xf32, #tpu.memory_space<vmem>>, vector<1x512xf32>
    %4 = vector.broadcast %3 : vector<1x512xf32> to vector<16x512xf32>
    %5 = arith.addf %2, %4 : vector<16x512xf32>
    %cst_5 = arith.constant dense<0xFF800000> : vector<16xf32>
    %6 = vector.multi_reduction <maximumf>, %5, %cst_5 [1] : vector<16x512xf32> to vector<16xf32>
    %7 = vector.shape_cast %6 : vector<16xf32> to vector<16x1xf32>
    %8 = vector.broadcast %7 : vector<16x1xf32> to vector<16x512xf32>
    %9 = arith.subf %5, %8 : vector<16x512xf32>
    %10 = math.exp %9 : vector<16x512xf32>
    %cst_6 = arith.constant dense<0.000000e+00> : vector<16xf32>
    %11 = vector.multi_reduction <add>, %10, %cst_6 [1] : vector<16x512xf32> to vector<16xf32>
    %12 = vector.shape_cast %11 : vector<16xf32> to vector<16x1xf32>
    %13 = math.log %12 : vector<16x1xf32>
    %14 = vector.broadcast %13 : vector<16x1xf32> to vector<16x512xf32>
    %15 = arith.subf %9, %14 : vector<16x512xf32>
    %c0_7 = arith.constant 0 : index
    %c0_8 = arith.constant 0 : index
    %16 = vector.load %arg4[%c0_7, %c0_8] : memref<16x512xf32, #tpu.memory_space<vmem>>, vector<16x512xf32>
    tpu.vector_store %arg4[%c0_7, %c0_8], %15 {strides = array<i32>} : memref<16x512xf32, #tpu.memory_space<vmem>>, vector<16x512xf32>,
    return
  }
  func.func @transform_0(%arg0: i32) -> (i32, i32) {
    %c0_i32 = arith.constant 0 : i32
    %c0_i32_0 = arith.constant 0 : i32
    return %arg0, %c0_i32 : i32, i32
  }
  func.func @transform_1(%arg0: i32) -> (i32, i32) {
    %c0_i32 = arith.constant 0 : i32
    %c0_i32_0 = arith.constant 0 : i32
    %c0_i32_1 = arith.constant 0 : i32
    return %c0_i32, %c0_i32_0 : i32, i32
  }
  func.func @transform_2(%arg0: i32) -> (i32, i32) {
    %c0_i32 = arith.constant 0 : i32
    %c0_i32_0 = arith.constant 0 : i32
    %c0_i32_1 = arith.constant 0 : i32
    return %c0_i32, %c0_i32_0 : i32, i32
  }
  func.func @transform_3(%arg0: i32) -> (i32, i32) {
    %c0_i32 = arith.constant 0 : i32
    %c0_i32_0 = arith.constant 0 : i32
    return %arg0, %c0_i32 : i32, i32
  }
}

module attributes {stable_mosaic.version = 11 : i64} {
  func.func @_proj_online_lse_kernel(%arg0: i32, %arg1: i32, %arg2: memref<16x64xbf16, #tpu.memory_space<vmem>>, %arg3: memref<64x512xbf16, #tpu.memory_space<vmem>>, %arg4: memref<1x512xf32, #tpu.memory_space<vmem>>, %arg5: memref<16x512xbf16, #tpu.memory_space<vmem>>, %arg6: memref<16x1xf32, #tpu.memory_space<vmem>>, %arg7: memref<16x1xf32, #tpu.memory_space<vmem>>, %arg8: memref<16x1xf32, #tpu.memory_space<vmem>>) attributes {dimension_semantics = [#tpu.dimension_semantics<parallel>, #tpu.dimension_semantics<arbitrary>], iteration_bounds = array<i64: 1, 1>, scalar_prefetch = 0 : i64, scratch_operands = 2 : i64, tpu.core_type = #tpu.core_type<tc>, window_params = [{transform_indices = @transform_0, window_bounds = array<i64: 16, 64>}, {transform_indices = @transform_1, window_bounds = array<i64: 64, 512>}, {transform_indices = @transform_2, window_bounds = array<i64: 1, 512>}, {transform_indices = @transform_3, window_bounds = array<i64: 16, 512>}, {transform_indices = @transform_4, window_bounds = array<i64: 16, 1>}]} {
    %c0_i32 = arith.constant 0 : i32
    %0 = arith.cmpi eq, %arg1, %c0_i32 : i32
    %1 = arith.extui %0 : i1 to i32
    %c0_i32_0 = arith.constant 0 : i32
    %2 = arith.cmpi ne, %1, %c0_i32_0 : i32
    scf.if %2 {
      %cst_20 = arith.constant 0xFF800000 : f32
      %30 = vector.broadcast %cst_20 : f32 to vector<16x1xf32>
      %c0_21 = arith.constant 0 : index
      %c0_22 = arith.constant 0 : index
      %31 = vector.load %arg7[%c0_21, %c0_22] : memref<16x1xf32, #tpu.memory_space<vmem>>, vector<16x1xf32>
      tpu.vector_store %arg7[%c0_21, %c0_22], %30 {strides = array<i32>} : memref<16x1xf32, #tpu.memory_space<vmem>>, vector<16x1xf32>,
      %cst_23 = arith.constant 0.000000e+00 : f32
      %32 = vector.broadcast %cst_23 : f32 to vector<16x1xf32>
      %c0_24 = arith.constant 0 : index
      %c0_25 = arith.constant 0 : index
      %33 = vector.load %arg8[%c0_24, %c0_25] : memref<16x1xf32, #tpu.memory_space<vmem>>, vector<16x1xf32>
      tpu.vector_store %arg8[%c0_24, %c0_25], %32 {strides = array<i32>} : memref<16x1xf32, #tpu.memory_space<vmem>>, vector<16x1xf32>,
    } else {
    }
    %c0 = arith.constant 0 : index
    %c0_1 = arith.constant 0 : index
    %3 = vector.load %arg2[%c0, %c0_1] : memref<16x64xbf16, #tpu.memory_space<vmem>>, vector<16x64xbf16>
    %c0_2 = arith.constant 0 : index
    %c0_3 = arith.constant 0 : index
    %4 = vector.load %arg3[%c0_2, %c0_3] : memref<64x512xbf16, #tpu.memory_space<vmem>>, vector<64x512xbf16>
    %cst = arith.constant dense<0.000000e+00> : vector<16x512xf32>
    %5 = tpu.matmul %3, %4, %cst {dimension_numbers = #tpu.dot_dimension_numbers<[1], [0], [0], [1], [0, 0, 1, 1], [], []>} : vector<16x64xbf16>, vector<64x512xbf16>, vector<16x512xf32> -> vector<16x512xf32>
    %c0_4 = arith.constant 0 : index
    %c0_5 = arith.constant 0 : index
    %6 = vector.load %arg4[%c0_4, %c0_5] : memref<1x512xf32, #tpu.memory_space<vmem>>, vector<1x512xf32>
    %7 = vector.broadcast %6 : vector<1x512xf32> to vector<16x512xf32>
    %8 = arith.addf %5, %7 : vector<16x512xf32>
    %9 = arith.truncf %8 : vector<16x512xf32> to vector<16x512xbf16>
    %c0_6 = arith.constant 0 : index
    %c0_7 = arith.constant 0 : index
    %10 = vector.load %arg5[%c0_6, %c0_7] : memref<16x512xbf16, #tpu.memory_space<vmem>>, vector<16x512xbf16>
    tpu.vector_store %arg5[%c0_6, %c0_7], %9 {strides = array<i32>} : memref<16x512xbf16, #tpu.memory_space<vmem>>, vector<16x512xbf16>,
    %c0_8 = arith.constant 0 : index
    %c0_9 = arith.constant 0 : index
    %11 = vector.load %arg7[%c0_8, %c0_9] : memref<16x1xf32, #tpu.memory_space<vmem>>, vector<16x1xf32>
    %cst_10 = arith.constant dense<0xFF800000> : vector<16xf32>
    %12 = vector.multi_reduction <maximumf>, %8, %cst_10 [1] : vector<16x512xf32> to vector<16xf32>
    %13 = vector.shape_cast %12 : vector<16xf32> to vector<16x1xf32>
    %14 = arith.maximumf %11, %13 : vector<16x1xf32>
    %15 = arith.subf %11, %14 : vector<16x1xf32>
    %16 = math.exp %15 : vector<16x1xf32>
    %c0_11 = arith.constant 0 : index
    %c0_12 = arith.constant 0 : index
    %17 = vector.load %arg8[%c0_11, %c0_12] : memref<16x1xf32, #tpu.memory_space<vmem>>, vector<16x1xf32>
    %18 = arith.mulf %16, %17 : vector<16x1xf32>
    %19 = vector.broadcast %14 : vector<16x1xf32> to vector<16x512xf32>
    %20 = arith.subf %8, %19 : vector<16x512xf32>
    %21 = math.exp %20 : vector<16x512xf32>
    %cst_13 = arith.constant dense<0.000000e+00> : vector<16xf32>
    %22 = vector.multi_reduction <add>, %21, %cst_13 [1] : vector<16x512xf32> to vector<16xf32>
    %23 = vector.shape_cast %22 : vector<16xf32> to vector<16x1xf32>
    %24 = arith.addf %18, %23 : vector<16x1xf32>
    %c0_14 = arith.constant 0 : index
    %c0_15 = arith.constant 0 : index
    %25 = vector.load %arg8[%c0_14, %c0_15] : memref<16x1xf32, #tpu.memory_space<vmem>>, vector<16x1xf32>
    tpu.vector_store %arg8[%c0_14, %c0_15], %24 {strides = array<i32>} : memref<16x1xf32, #tpu.memory_space<vmem>>, vector<16x1xf32>,
    %c0_16 = arith.constant 0 : index
    %c0_17 = arith.constant 0 : index
    %26 = vector.load %arg7[%c0_16, %c0_17] : memref<16x1xf32, #tpu.memory_space<vmem>>, vector<16x1xf32>
    tpu.vector_store %arg7[%c0_16, %c0_17], %14 {strides = array<i32>} : memref<16x1xf32, #tpu.memory_space<vmem>>, vector<16x1xf32>,
    %c0_i32_18 = arith.constant 0 : i32
    %27 = arith.cmpi eq, %arg1, %c0_i32_18 : i32
    %28 = arith.extui %27 : i1 to i32
    %c0_i32_19 = arith.constant 0 : i32
    %29 = arith.cmpi ne, %28, %c0_i32_19 : i32
    scf.if %29 {
      %c0_20 = arith.constant 0 : index
      %c0_21 = arith.constant 0 : index
      %30 = vector.load %arg7[%c0_20, %c0_21] : memref<16x1xf32, #tpu.memory_space<vmem>>, vector<16x1xf32>
      %c0_22 = arith.constant 0 : index
      %c0_23 = arith.constant 0 : index
      %31 = vector.load %arg8[%c0_22, %c0_23] : memref<16x1xf32, #tpu.memory_space<vmem>>, vector<16x1xf32>
      %32 = math.log %31 : vector<16x1xf32>
      %33 = arith.addf %30, %32 : vector<16x1xf32>
      %c0_24 = arith.constant 0 : index
      %c0_25 = arith.constant 0 : index
      %34 = vector.load %arg6[%c0_24, %c0_25] : memref<16x1xf32, #tpu.memory_space<vmem>>, vector<16x1xf32>
      tpu.vector_store %arg6[%c0_24, %c0_25], %33 {strides = array<i32>} : memref<16x1xf32, #tpu.memory_space<vmem>>, vector<16x1xf32>,
    } else {
    }
    return
  }
  func.func @transform_0(%arg0: i32, %arg1: i32) -> (i32, i32) {
    %c0_i32 = arith.constant 0 : i32
    %c0_i32_0 = arith.constant 0 : i32
    return %arg0, %c0_i32 : i32, i32
  }
  func.func @transform_1(%arg0: i32, %arg1: i32) -> (i32, i32) {
    %c0_i32 = arith.constant 0 : i32
    %c0_i32_0 = arith.constant 0 : i32
    return %c0_i32, %arg1 : i32, i32
  }
  func.func @transform_2(%arg0: i32, %arg1: i32) -> (i32, i32) {
    %c0_i32 = arith.constant 0 : i32
    %c0_i32_0 = arith.constant 0 : i32
    return %c0_i32, %arg1 : i32, i32
  }
  func.func @transform_3(%arg0: i32, %arg1: i32) -> (i32, i32) {
    %c0_i32 = arith.constant 0 : i32
    return %arg0, %arg1 : i32, i32
  }
  func.func @transform_4(%arg0: i32, %arg1: i32) -> (i32, i32) {
    %c0_i32 = arith.constant 0 : i32
    %c0_i32_0 = arith.constant 0 : i32
    return %arg0, %c0_i32 : i32, i32
  }
}

</mosaic_0001>

<bundles_post_ra>
// kernel: tpu_custom_call.1
= control target key start
LH: loop header
LB: loop body
LE: loop exit
PB: predicated region body
PF: predicated region fallthrough
CT: control target
= control target key end

     0   :  { %8 = vsyncpa [#allocation3], 0  ;;  %s556_s0 = inlined_call_operand.hbm [shape: bf16[16,64], index: 0, kind: input, shape index: {}]   ;;  %s557_s1 = inlined_call_operand.hbm [shape: bf16[64,512], index: 1, kind: input, shape index: {}]   ;;  %s558_s2 = inlined_call_operand.hbm [shape: f32[1,512], index: 2, kind: input, shape index: {}]   ;;  %s559_s3 = inlined_call_operand.hbm [shape: f32[16,512], index: 3, kind: output, shape index: {}]  }
   0x1   :  { %9 = vsyncpa [#allocation6], 0 }
   0x2   :  { %10 = vsyncpa [#allocation4], 0  ;;  %s513_s12 = smov [#allocation5]  }
   0x3   :  { %s28_s13 = sshll.u32 %s513_s12, 4  ;;  %s29_s13 = int_to_ptr.vmem [resolvable:$true] %s28_s13 }
   0x4   :  { %s435_s14 = scalar_lea.vmem %s29_s13, 2048  ;;  %p440_p1 = scmp.lt.s32.totalorder %s29_s13, %s29_s13 }
   0x5   :  { %p436_p0 = scmp.ne.s32.totalorder %s29_s13, %s435_s14  ;;  %p441_p2 = scmp.lt.s32.totalorder %s435_s14, %s435_s14 }
   0x7   :  { %p442_p3 = por %p441_p2, %p440_p1 }
   0x9   :  { %p443_p4 = pnand %p442_p3, %p436_p0 }
   0xb   :  { %446 = shalt.err (!%p443_p4)
}
   0xc   :  { %s514_s15 = smov 256   ;;  %s515_s16 = smov 16  }
   0xd   :  { %34 = dma.hbm_to_vmem [thread:$0]  %s557_s1, 2048, %s29_s13, [#allocation6], %s514_s15, %s514_s15, %s515_s16  }
   0xe   :  { %s516_s19 = smov [#allocation2]  }
   0xf   :  { %s16_s20 = sshll.u32 %s516_s19, 4  ;;  %s17_s20 = int_to_ptr.vmem [resolvable:$true] %s16_s20 }
  0x10   :  { %s455_s21 = scalar_lea.vmem %s17_s20, 128  ;;  %p460_p6 = scmp.lt.s32.totalorder %s17_s20, %s17_s20 }
  0x11   :  { %p456_p5 = scmp.ne.s32.totalorder %s17_s20, %s455_s21  ;;  %p461_p7 = scmp.lt.s32.totalorder %s455_s21, %s455_s21 }
  0x13   :  { %p462_p8 = por %p461_p7, %p460_p6 }
  0x15   :  { %p463_p9 = pnand %p462_p8, %p456_p5 }
  0x17   :  { %466 = shalt.err (!%p463_p9)
}
  0x18   :  { %s517_s22 = smov 64   ;;  %s518_s23 = smov 4  }
  0x19   :  { %22 = dma.hbm_to_vmem [thread:$0]  %s556_s0, 128, %s17_s20, [#allocation3], %s517_s22, %s517_s22, %s518_s23  }
  0x1a   :  { %s519_s26 = smov [#allocation7]  }
  0x1b   :  { %s41_s27 = sshll.u32 %s519_s26, 4  ;;  %s42_s27 = int_to_ptr.vmem [resolvable:$true] %s41_s27 }
  0x1c   :  { %s475_s1 = scalar_lea.vmem %s42_s27, 64  ;;  %p480_p11 = scmp.lt.s32.totalorder %s42_s27, %s42_s27 }
  0x1d   :  { %p476_p10 = scmp.ne.s32.totalorder %s42_s27, %s475_s1  ;;  %p481_p12 = scmp.lt.s32.totalorder %s475_s1, %s475_s1 }
  0x1f   :  { %p482_p13 = por %p481_p12, %p480_p11 }
  0x21   :  { %p483_p0 = pnand %p482_p13, %p476_p10 }
  0x23   :  { %486 = shalt.err (!%p483_p0)
}
  0x24   :  { %44 = dma.hbm_to_vmem [thread:$0]  %s558_s2, 64, %s42_s27, [#allocation6]  }
  0x25   :  { %507 = dma.done.wait [#allocation3], 128  }
  0x26   :  { %508 = vsyncadd [#allocation3], 4294967168 }
  0x27   :  { %509 = dma.done.wait [#allocation6], 2112  }
  0x28   :  { %510 = vsyncadd [#allocation6], 4294965184  ;;  %v520_v0 = vmov 0   ;;  %v382_v1 = vld [vmem:[#allocation5 + $0x64] ss:$16 sps:$4 sm:$0xff]   ;;  %v406_v17 = vld [vmem:[#allocation2] sm:$0xff]   ;;  %v75_v18 = vlaneseq }
  0x29   :  { %216 = vmatprep.mubr.bf16.mxu0 %v520_v0  ;;  %259 = vmatprep.mubr.bf16.mxu1 %v520_v0  ;;  %v384_v2 = vld [vmem:[#allocation5 + $0x6c] ss:$16 sps:$4 sm:$0xff]   ;;  %v386_v3 = vld [vmem:[#allocation5 + $0x60] ss:$16 sps:$4 sm:$0xff]   ;;  %v387_v4 = vld [vmem:[#allocation5 + $0x68] ss:$16 sps:$4 sm:$0xff]  }
  0x2a   :  { %192 = vmatprep.subr.bf16.mxu0 %v382_v1  ;;  %235 = vmatprep.subr.bf16.mxu1 %v384_v2  ;;  %v388_v5 = vld [vmem:[#allocation5 + $0x44] ss:$16 sps:$4 sm:$0xff]   ;;  %v390_v6 = vld [vmem:[#allocation5 + $0x4c] ss:$16 sps:$4 sm:$0xff]   ;;  %v392_v7 = vld [vmem:[#allocation5 + $0x40] ss:$16 sps:$4 sm:$0xff]  }
  0x2b   :  { %193 = vmatpush1.bf16.msra.mxu0 %v386_v3  ;;  %236 = vmatpush1.bf16.msra.mxu1 %v387_v4  ;;  %v393_v8 = vld [vmem:[#allocation5 + $0x48] ss:$16 sps:$4 sm:$0xff]   ;;  %v394_v9 = vld [vmem:[#allocation5 + $0x24] ss:$16 sps:$4 sm:$0xff]   ;;  %v396_v10 = vld [vmem:[#allocation5 + $0x2c] ss:$16 sps:$4 sm:$0xff]  }
  0x2c   :  { %194 = vmatprep.subr.bf16.mxu0 %v388_v5  ;;  %237 = vmatprep.subr.bf16.mxu1 %v390_v6  ;;  %v398_v11 = vld [vmem:[#allocation5 + $0x20] ss:$16 sps:$4 sm:$0xff]   ;;  %v399_v12 = vld [vmem:[#allocation5 + $0x28] ss:$16 sps:$4 sm:$0xff]   ;;  %v400_v13 = vld [vmem:[#allocation5 + $0x4] ss:$16 sps:$4 sm:$0xff]  }
  0x2d   :  { %v402_v14 = vld [vmem:[#allocation5 + $0xc] ss:$16 sps:$4 sm:$0xff]   ;;  %v404_v15 = vld [vmem:[#allocation5] ss:$16 sps:$4 sm:$0xff]   ;;  %v405_v16 = vld [vmem:[#allocation5 + $0x8] ss:$16 sps:$4 sm:$0xff]  }
  0x2e   :  { %vm180_vm0 = vcmask 523264   ;;  %v76_v19 = vshrl.u32 %v75_v18, 7  ;;  %v73_v22 = vld [vmem:[#allocation7] sm:$0xf]  ;;  %s521_s0 = smov [#allocation8]  }
  0x2f   :  { %195 = vmatpush1.bf16.msra.mxu0 %v392_v7  ;;  %238 = vmatpush1.bf16.msra.mxu1 %v393_v8  ;;  %s339_s2 = sshll.u32 %s521_s0, 4  ;;  %s340_s2 = int_to_ptr.vmem [resolvable:$true] %s339_s2 }
  0x30   :  { %196 = vmatprep.subr.bf16.mxu0 %v394_v9  ;;  %239 = vmatprep.subr.bf16.mxu1 %v396_v10  ;;  %v77_v20 = vsub.s32 0, %v76_v19  ;;  %v85_v21 = vsub.s32 2, %v76_v19  ;;  %v81_v23 = vsub.s32 1, %v76_v19  ;;  %v89_v24 = vsub.s32 3, %v76_v19  ;;  %s487_s30 = scalar_lea.vmem %s340_s2, 1024  ;;  %p492_p2 = scmp.lt.s32.totalorder %s340_s2, %s340_s2 }
  0x31   :  { %p488_p1 = scmp.ne.s32.totalorder %s340_s2, %s487_s30  ;;  %p493_p3 = scmp.lt.s32.totalorder %s487_s30, %s487_s30 }
  0x32   :  { %v78_v25 = vrot.slane %v73_v22, %v77_v20  ;;  %v86_v26 = vrot.slane %v73_v22, %v85_v21  ;;  %v82_v27 = vrot.slane %v73_v22, %v81_v23  ;;  %v90_v28 = vrot.slane %v73_v22, %v89_v24 }
  0x33   :  { %197 = vmatpush1.bf16.msra.mxu0 %v398_v11  ;;  %240 = vmatpush1.bf16.msra.mxu1 %v399_v12  ;;  %p494_p4 = por %p493_p3, %p492_p2 }
  0x34   :  { %198 = vmatprep.subr.bf16.mxu0 %v400_v13  ;;  %241 = vmatprep.subr.bf16.mxu1 %v402_v14 }
  0x35   :  { %p495_p5 = pnand %p494_p4, %p488_p1 }
  0x37   :  { %199 = vmatpush1.bf16.msra.mxu0 %v404_v15  ;;  %242 = vmatpush1.bf16.msra.mxu1 %v405_v16 }
  0x3a   :  { %369 = vmatmul.mubr.msk.bf16.vlgmr.msra.gmra.mxu0 %vm180_vm0, %v406_v17  ;;  %370 = vmatmul.mubr.msk.bf16.vlgmr.msra.gmra.mxu1 %vm180_vm0, %v406_v17 }
  0xfa   :  { %v218_v29 = vpop.f32.mrf.mxu0  ;;  %v261_v30 = vpop.f32.mrf.mxu1 }
  0xfb   :  { %v219_v31 = vadd.f32 %v218_v29, %v78_v25  ;;  %v262_v32 = vadd.f32 %v261_v30, %v86_v26 }
  0xfc   :  { %v220_v33 = vpop.f32.mrf.mxu0  ;;  %v263_v34 = vpop.f32.mrf.mxu1 }
  0xfd   :  { %v221_v35 = vadd.f32 %v220_v33, %v82_v27  ;;  %v264_v36 = vadd.f32 %v263_v34, %v90_v28  ;;  %v270_v41 = vmax.f32 %v219_v31, %v262_v32 }
  0xfe   :  { %v222_v37 = vpop.f32.mrf.mxu0  ;;  %v265_v38 = vpop.f32.mrf.mxu1 }
  0xff   :  { %v223_v39 = vadd.f32 %v222_v37, %v78_v25  ;;  %v266_v40 = vadd.f32 %v265_v38, %v86_v26  ;;  %v271_v42 = vmax.f32 %v221_v35, %v264_v36 }
 0x100   :  { %v224_v43 = vpop.f32.mrf.mxu0  ;;  %v267_v44 = vpop.f32.mrf.mxu1 }
 0x101   :  { %v225_v45 = vadd.f32 %v224_v43, %v82_v27  ;;  %v268_v46 = vadd.f32 %v267_v44, %v90_v28  ;;  %v272_v47 = vmax.f32 %v270_v41, %v271_v42  ;;  %v275_v48 = vmax.f32 %v223_v39, %v266_v40 }
 0x103   :  { %v276_v49 = vmax.f32 %v225_v45, %v268_v46  ;;  %273 = vmax.xlane.f32.xlu0 %v272_v47 }
 0x105   :  { %v277_v50 = vmax.f32 %v275_v48, %v276_v49 }
 0x107   :  { %278 = vmax.xlane.f32.xlu0 %v277_v50 }
 0x18c   :  { %v274_v51 = vpop.xlane.xlu0 %273 }
 0x18d   :  { %v280_v52 = vsub.f32 %v219_v31, %v274_v51  ;;  %v281_v53 = vsub.f32 %v221_v35, %v274_v51  ;;  %v282_v54 = vsub.f32 %v262_v32, %v274_v51  ;;  %v283_v55 = vsub.f32 %v264_v36, %v274_v51 }
 0x18f   :  { %v288_v56 = vmul.f32 1.442695, %v280_v52  ;;  %v290_v57 = vmul.f32 1.442695, %v281_v53  ;;  %v292_v58 = vmul.f32 1.442695, %v282_v54 }
 0x190   :  { %v294_v59 = vmul.f32 1.442695, %v283_v55  ;;  %v279_v60 = vpop.xlane.xlu0 %278 }
 0x191   :  { %407 = vpow2.f32 %v288_v56  ;;  %v284_v61 = vsub.f32 %v223_v39, %v279_v60  ;;  %v285_v62 = vsub.f32 %v225_v45, %v279_v60  ;;  %v286_v63 = vsub.f32 %v266_v40, %v279_v60 }
 0x192   :  { %409 = vpow2.f32 %v290_v57  ;;  %v287_v0 = vsub.f32 %v268_v46, %v279_v60 }
 0x193   :  { %411 = vpow2.f32 %v292_v58  ;;  %v296_v1 = vmul.f32 1.442695, %v284_v61  ;;  %v298_v2 = vmul.f32 1.442695, %v285_v62  ;;  %v300_v3 = vmul.f32 1.442695, %v286_v63 }
 0x194   :  { %413 = vpow2.f32 %v294_v59  ;;  %v302_v4 = vmul.f32 1.442695, %v287_v0 }
 0x195   :  { %415 = vpow2.f32 %v296_v1 }
 0x196   :  { %417 = vpow2.f32 %v298_v2 }
 0x197   :  { %419 = vpow2.f32 %v300_v3 }
 0x198   :  { %421 = vpow2.f32 %v302_v4 }
 0x19e   :  { %v408_v5 = vpop.eup %407 }
 0x19f   :  { %v410_v6 = vpop.eup %409 }
 0x1a0   :  { %v412_v7 = vpop.eup %411  ;;  %v304_v8 = vadd.f32 %v410_v6, %v408_v5 }
 0x1a1   :  { %v414_v9 = vpop.eup %413 }
 0x1a2   :  { %v416_v10 = vpop.eup %415  ;;  %v305_v11 = vadd.f32 %v412_v7, %v304_v8 }
 0x1a3   :  { %v418_v12 = vpop.eup %417 }
 0x1a4   :  { %v306_v13 = vadd.f32 %v414_v9, %v305_v11  ;;  %v309_v14 = vadd.f32 %v418_v12, %v416_v10  ;;  %v420_v15 = vpop.eup %419 }
 0x1a5   :  { %v422_v17 = vpop.eup %421 }
 0x1a6   :  { %307 = vadd.xlane.f32.xlu1 %v306_v13  ;;  %v310_v16 = vadd.f32 %v420_v15, %v309_v14 }
 0x1a8   :  { %v311_v18 = vadd.f32 %v422_v17, %v310_v16 }
 0x1aa   :  { %312 = vadd.xlane.f32.xlu1 %v311_v18 }
 0x22f   :  { %v308_v19 = vpop.xlane.xlu1 %307 }
 0x230   :  { %423 = vlog2.f32 %v308_v19 }
 0x233   :  { %v313_v20 = vpop.xlane.xlu1 %312 }
 0x234   :  { %425 = vlog2.f32 %v313_v20 }
 0x23d   :  { %v424_v21 = vpop.eup %423 }
 0x23e   :  { %v315_v22 = vmul.f32 0.6931472, %v424_v21 }
 0x240   :  { %v318_v23 = vsub.f32 %v280_v52, %v315_v22  ;;  %v319_v24 = vsub.f32 %v281_v53, %v315_v22  ;;  %v320_v25 = vsub.f32 %v282_v54, %v315_v22  ;;  %v321_v26 = vsub.f32 %v283_v55, %v315_v22 }
 0x241   :  { %v426_v27 = vpop.eup %425 }
 0x242   :  { %326 = vst [vmem:[#allocation8] sm:$0xff] %v318_v23  ;;  %327 = vst [vmem:[#allocation8 + $0x8] sm:$0xff] %v319_v24  ;;  %v317_v28 = vmul.f32 0.6931472, %v426_v27 }
 0x243   :  { %328 = vst [vmem:[#allocation8 + $0x10] sm:$0xff] %v320_v25  ;;  %329 = vst [vmem:[#allocation8 + $0x18] sm:$0xff] %v321_v26 }
 0x244   :  { %v322_v29 = vsub.f32 %v284_v61, %v317_v28  ;;  %v323_v30 = vsub.f32 %v285_v62, %v317_v28  ;;  %v324_v31 = vsub.f32 %v286_v63, %v317_v28  ;;  %v325_v32 = vsub.f32 %v287_v0, %v317_v28 }
 0x246   :  { %330 = vst [vmem:[#allocation8 + $0x20] sm:$0xff] %v322_v29  ;;  %331 = vst [vmem:[#allocation8 + $0x28] sm:$0xff] %v323_v30 }
 0x247   :  { %332 = vst [vmem:[#allocation8 + $0x30] sm:$0xff] %v324_v31  ;;  %333 = vst [vmem:[#allocation8 + $0x38] sm:$0xff] %v325_v32 }
 0x248   :  { %498 = shalt.err (!%p495_p5)
}
 0x249   :  { %s522_s4 = smov 512   ;;  %s523_s5 = smov 32  }
 0x24a   :  { %345 = dma.vmem_to_hbm [thread:$0]  %s340_s2, 1024, %s559_s3, [#allocation4], %s522_s4, %s522_s4, %s523_s5  }
 0x24b   :  { %511 = dma.done.wait [#allocation4], 1024  }
 0x24c   :  { %512 = vsyncadd [#allocation4], 4294966272 }
 0x24d   :  { %349 = vsyncpa [#allocation3], 1 }
 0x24e   :  { %350 = vsyncpa [#allocation6], 1 }
 0x24f   :  { %351 = vsyncpa [#allocation4], 1 }

// kernel: tpu_custom_call.1
= control target key start
LH: loop header
LB: loop body
LE: loop exit
PB: predicated region body
PF: predicated region fallthrough
CT: control target
= control target key end

     0   :  { %8 = vsyncpa [#allocation3], 0  ;;  %s556_s0 = inlined_call_operand.hbm [shape: bf16[16,64], index: 0, kind: input, shape index: {}]   ;;  %s557_s1 = inlined_call_operand.hbm [shape: bf16[64,512], index: 1, kind: input, shape index: {}]   ;;  %s558_s2 = inlined_call_operand.hbm [shape: f32[1,512], index: 2, kind: input, shape index: {}]   ;;  %s559_s3 = inlined_call_operand.hbm [shape: f32[16,512], index: 3, kind: output, shape index: {}]  }
   0x1   :  { %9 = vsyncpa [#allocation6], 0 }
   0x2   :  { %10 = vsyncpa [#allocation4], 0  ;;  %s513_s12 = smov [#allocation5]  }
   0x3   :  { %s28_s13 = sshll.u32 %s513_s12, 4  ;;  %s29_s13 = int_to_ptr.vmem [resolvable:$true] %s28_s13 }
   0x4   :  { %s435_s14 = scalar_lea.vmem %s29_s13, 2048  ;;  %p440_p1 = scmp.lt.s32.totalorder %s29_s13, %s29_s13 }
   0x5   :  { %p436_p0 = scmp.ne.s32.totalorder %s29_s13, %s435_s14  ;;  %p441_p2 = scmp.lt.s32.totalorder %s435_s14, %s435_s14 }
   0x7   :  { %p442_p3 = por %p441_p2, %p440_p1 }
   0x9   :  { %p443_p4 = pnand %p442_p3, %p436_p0 }
   0xb   :  { %446 = shalt.err (!%p443_p4)
}
   0xc   :  { %s514_s15 = smov 256   ;;  %s515_s16 = smov 16  }
   0xd   :  { %34 = dma.hbm_to_vmem [thread:$0]  %s557_s1, 2048, %s29_s13, [#allocation6], %s514_s15, %s514_s15, %s515_s16  }
   0xe   :  { %s516_s19 = smov [#allocation2]  }
   0xf   :  { %s16_s20 = sshll.u32 %s516_s19, 4  ;;  %s17_s20 = int_to_ptr.vmem [resolvable:$true] %s16_s20 }
  0x10   :  { %s455_s21 = scalar_lea.vmem %s17_s20, 128  ;;  %p460_p6 = scmp.lt.s32.totalorder %s17_s20, %s17_s20 }
  0x11   :  { %p456_p5 = scmp.ne.s32.totalorder %s17_s20, %s455_s21  ;;  %p461_p7 = scmp.lt.s32.totalorder %s455_s21, %s455_s21 }
  0x13   :  { %p462_p8 = por %p461_p7, %p460_p6 }
  0x15   :  { %p463_p9 = pnand %p462_p8, %p456_p5 }
  0x17   :  { %466 = shalt.err (!%p463_p9)
}
  0x18   :  { %s517_s22 = smov 64   ;;  %s518_s23 = smov 4  }
  0x19   :  { %22 = dma.hbm_to_vmem [thread:$0]  %s556_s0, 128, %s17_s20, [#allocation3], %s517_s22, %s517_s22, %s518_s23  }
  0x1a   :  { %s519_s26 = smov [#allocation7]  }
  0x1b   :  { %s41_s27 = sshll.u32 %s519_s26, 4  ;;  %s42_s27 = int_to_ptr.vmem [resolvable:$true] %s41_s27 }
  0x1c   :  { %s475_s1 = scalar_lea.vmem %s42_s27, 64  ;;  %p480_p11 = scmp.lt.s32.totalorder %s42_s27, %s42_s27 }
  0x1d   :  { %p476_p10 = scmp.ne.s32.totalorder %s42_s27, %s475_s1  ;;  %p481_p12 = scmp.lt.s32.totalorder %s475_s1, %s475_s1 }
  0x1f   :  { %p482_p13 = por %p481_p12, %p480_p11 }
  0x21   :  { %p483_p0 = pnand %p482_p13, %p476_p10 }
  0x23   :  { %486 = shalt.err (!%p483_p0)
}
  0x24   :  { %44 = dma.hbm_to_vmem [thread:$0]  %s558_s2, 64, %s42_s27, [#allocation6]  }
  0x25   :  { %507 = dma.done.wait [#allocation3], 128  }
  0x26   :  { %508 = vsyncadd [#allocation3], 4294967168 }
  0x27   :  { %509 = dma.done.wait [#allocation6], 2112  }
  0x28   :  { %510 = vsyncadd [#allocation6], 4294965184  ;;  %v520_v0 = vmov 0   ;;  %v382_v1 = vld [vmem:[#allocation5 + $0x64] ss:$16 sps:$4 sm:$0xff]   ;;  %v406_v17 = vld [vmem:[#allocation2] sm:$0xff]   ;;  %v75_v18 = vlaneseq }
  0x29   :  { %216 = vmatprep.mubr.bf16.mxu0 %v520_v0  ;;  %259 = vmatprep.mubr.bf16.mxu1 %v520_v0  ;;  %v384_v2 = vld [vmem:[#allocation5 + $0x6c] ss:$16 sps:$4 sm:$0xff]   ;;  %v386_v3 = vld [vmem:[#allocation5 + $0x60] ss:$16 sps:$4 sm:$0xff]   ;;  %v387_v4 = vld [vmem:[#allocation5 + $0x68] ss:$16 sps:$4 sm:$0xff]  }
  0x2a   :  { %192 = vmatprep.subr.bf16.mxu0 %v382_v1  ;;  %235 = vmatprep.subr.bf16.mxu1 %v384_v2  ;;  %v388_v5 = vld [vmem:[#allocation5 + $0x44] ss:$16 sps:$4 sm:$0xff]   ;;  %v390_v6 = vld [vmem:[#allocation5 + $0x4c] ss:$16 sps:$4 sm:$0xff]   ;;  %v392_v7 = vld [vmem:[#allocation5 + $0x40] ss:$16 sps:$4 sm:$0xff]  }
  0x2b   :  { %193 = vmatpush1.bf16.msra.mxu0 %v386_v3  ;;  %236 = vmatpush1.bf16.msra.mxu1 %v387_v4  ;;  %v393_v8 = vld [vmem:[#allocation5 + $0x48] ss:$16 sps:$4 sm:$0xff]   ;;  %v394_v9 = vld [vmem:[#allocation5 + $0x24] ss:$16 sps:$4 sm:$0xff]   ;;  %v396_v10 = vld [vmem:[#allocation5 + $0x2c] ss:$16 sps:$4 sm:$0xff]  }
  0x2c   :  { %194 = vmatprep.subr.bf16.mxu0 %v388_v5  ;;  %237 = vmatprep.subr.bf16.mxu1 %v390_v6  ;;  %v398_v11 = vld [vmem:[#allocation5 + $0x20] ss:$16 sps:$4 sm:$0xff]   ;;  %v399_v12 = vld [vmem:[#allocation5 + $0x28] ss:$16 sps:$4 sm:$0xff]   ;;  %v400_v13 = vld [vmem:[#allocation5 + $0x4] ss:$16 sps:$4 sm:$0xff]  }
  0x2d   :  { %v402_v14 = vld [vmem:[#allocation5 + $0xc] ss:$16 sps:$4 sm:$0xff]   ;;  %v404_v15 = vld [vmem:[#allocation5] ss:$16 sps:$4 sm:$0xff]   ;;  %v405_v16 = vld [vmem:[#allocation5 + $0x8] ss:$16 sps:$4 sm:$0xff]  }
  0x2e   :  { %vm180_vm0 = vcmask 523264   ;;  %v76_v19 = vshrl.u32 %v75_v18, 7  ;;  %v73_v22 = vld [vmem:[#allocation7] sm:$0xf]  ;;  %s521_s0 = smov [#allocation8]  }
  0x2f   :  { %195 = vmatpush1.bf16.msra.mxu0 %v392_v7  ;;  %238 = vmatpush1.bf16.msra.mxu1 %v393_v8  ;;  %s339_s2 = sshll.u32 %s521_s0, 4  ;;  %s340_s2 = int_to_ptr.vmem [resolvable:$true] %s339_s2 }
  0x30   :  { %196 = vmatprep.subr.bf16.mxu0 %v394_v9  ;;  %239 = vmatprep.subr.bf16.mxu1 %v396_v10  ;;  %v77_v20 = vsub.s32 0, %v76_v19  ;;  %v85_v21 = vsub.s32 2, %v76_v19  ;;  %v81_v23 = vsub.s32 1, %v76_v19  ;;  %v89_v24 = vsub.s32 3, %v76_v19  ;;  %s487_s30 = scalar_lea.vmem %s340_s2, 1024  ;;  %p492_p2 = scmp.lt.s32.totalorder %s340_s2, %s340_s2 }
  0x31   :  { %p488_p1 = scmp.ne.s32.totalorder %s340_s2, %s487_s30  ;;  %p493_p3 = scmp.lt.s32.totalorder %s487_s30, %s487_s30 }
  0x32   :  { %v78_v25 = vrot.slane %v73_v22, %v77_v20  ;;  %v86_v26 = vrot.slane %v73_v22, %v85_v21  ;;  %v82_v27 = vrot.slane %v73_v22, %v81_v23  ;;  %v90_v28 = vrot.slane %v73_v22, %v89_v24 }
  0x33   :  { %197 = vmatpush1.bf16.msra.mxu0 %v398_v11  ;;  %240 = vmatpush1.bf16.msra.mxu1 %v399_v12  ;;  %p494_p4 = por %p493_p3, %p492_p2 }
  0x34   :  { %198 = vmatprep.subr.bf16.mxu0 %v400_v13  ;;  %241 = vmatprep.subr.bf16.mxu1 %v402_v14 }
  0x35   :  { %p495_p5 = pnand %p494_p4, %p488_p1 }
  0x37   :  { %199 = vmatpush1.bf16.msra.mxu0 %v404_v15  ;;  %242 = vmatpush1.bf16.msra.mxu1 %v405_v16 }
  0x3a   :  { %369 = vmatmul.mubr.msk.bf16.vlgmr.msra.gmra.mxu0 %vm180_vm0, %v406_v17  ;;  %370 = vmatmul.mubr.msk.bf16.vlgmr.msra.gmra.mxu1 %vm180_vm0, %v406_v17 }
  0xfa   :  { %v218_v29 = vpop.f32.mrf.mxu0  ;;  %v261_v30 = vpop.f32.mrf.mxu1 }
  0xfb   :  { %v219_v31 = vadd.f32 %v218_v29, %v78_v25  ;;  %v262_v32 = vadd.f32 %v261_v30, %v86_v26 }
  0xfc   :  { %v220_v33 = vpop.f32.mrf.mxu0  ;;  %v263_v34 = vpop.f32.mrf.mxu1 }
  0xfd   :  { %v221_v35 = vadd.f32 %v220_v33, %v82_v27  ;;  %v264_v36 = vadd.f32 %v263_v34, %v90_v28  ;;  %v270_v41 = vmax.f32 %v219_v31, %v262_v32 }
  0xfe   :  { %v222_v37 = vpop.f32.mrf.mxu0  ;;  %v265_v38 = vpop.f32.mrf.mxu1 }
  0xff   :  { %v223_v39 = vadd.f32 %v222_v37, %v78_v25  ;;  %v266_v40 = vadd.f32 %v265_v38, %v86_v26  ;;  %v271_v42 = vmax.f32 %v221_v35, %v264_v36 }
 0x100   :  { %v224_v43 = vpop.f32.mrf.mxu0  ;;  %v267_v44 = vpop.f32.mrf.mxu1 }
 0x101   :  { %v225_v45 = vadd.f32 %v224_v43, %v82_v27  ;;  %v268_v46 = vadd.f32 %v267_v44, %v90_v28  ;;  %v272_v47 = vmax.f32 %v270_v41, %v271_v42  ;;  %v275_v48 = vmax.f32 %v223_v39, %v266_v40 }
 0x103   :  { %v276_v49 = vmax.f32 %v225_v45, %v268_v46  ;;  %273 = vmax.xlane.f32.xlu0 %v272_v47 }
 0x105   :  { %v277_v50 = vmax.f32 %v275_v48, %v276_v49 }
 0x107   :  { %278 = vmax.xlane.f32.xlu0 %v277_v50 }
 0x18c   :  { %v274_v51 = vpop.xlane.xlu0 %273 }
 0x18d   :  { %v280_v52 = vsub.f32 %v219_v31, %v274_v51  ;;  %v281_v53 = vsub.f32 %v221_v35, %v274_v51  ;;  %v282_v54 = vsub.f32 %v262_v32, %v274_v51  ;;  %v283_v55 = vsub.f32 %v264_v36, %v274_v51 }
 0x18f   :  { %v288_v56 = vmul.f32 1.442695, %v280_v52  ;;  %v290_v57 = vmul.f32 1.442695, %v281_v53  ;;  %v292_v58 = vmul.f32 1.442695, %v282_v54 }
 0x190   :  { %v294_v59 = vmul.f32 1.442695, %v283_v55  ;;  %v279_v60 = vpop.xlane.xlu0 %278 }
 0x191   :  { %407 = vpow2.f32 %v288_v56  ;;  %v284_v61 = vsub.f32 %v223_v39, %v279_v60  ;;  %v285_v62 = vsub.f32 %v225_v45, %v279_v60  ;;  %v286_v63 = vsub.f32 %v266_v40, %v279_v60 }
 0x192   :  { %409 = vpow2.f32 %v290_v57  ;;  %v287_v0 = vsub.f32 %v268_v46, %v279_v60 }
 0x193   :  { %411 = vpow2.f32 %v292_v58  ;;  %v296_v1 = vmul.f32 1.442695, %v284_v61  ;;  %v298_v2 = vmul.f32 1.442695, %v285_v62  ;;  %v300_v3 = vmul.f32 1.442695, %v286_v63 }
 0x194   :  { %413 = vpow2.f32 %v294_v59  ;;  %v302_v4 = vmul.f32 1.442695, %v287_v0 }
 0x195   :  { %415 = vpow2.f32 %v296_v1 }
 0x196   :  { %417 = vpow2.f32 %v298_v2 }
 0x197   :  { %419 = vpow2.f32 %v300_v3 }
 0x198   :  { %421 = vpow2.f32 %v302_v4 }
 0x19e   :  { %v408_v5 = vpop.eup %407 }
 0x19f   :  { %v410_v6 = vpop.eup %409 }
 0x1a0   :  { %v412_v7 = vpop.eup %411  ;;  %v304_v8 = vadd.f32 %v410_v6, %v408_v5 }
 0x1a1   :  { %v414_v9 = vpop.eup %413 }
 0x1a2   :  { %v416_v10 = vpop.eup %415  ;;  %v305_v11 = vadd.f32 %v412_v7, %v304_v8 }
 0x1a3   :  { %v418_v12 = vpop.eup %417 }
 0x1a4   :  { %v306_v13 = vadd.f32 %v414_v9, %v305_v11  ;;  %v309_v14 = vadd.f32 %v418_v12, %v416_v10  ;;  %v420_v15 = vpop.eup %419 }
 0x1a5   :  { %v422_v17 = vpop.eup %421 }
 0x1a6   :  { %307 = vadd.xlane.f32.xlu1 %v306_v13  ;;  %v310_v16 = vadd.f32 %v420_v15, %v309_v14 }
 0x1a8   :  { %v311_v18 = vadd.f32 %v422_v17, %v310_v16 }
 0x1aa   :  { %312 = vadd.xlane.f32.xlu1 %v311_v18 }
 0x22f   :  { %v308_v19 = vpop.xlane.xlu1 %307 }
 0x230   :  { %423 = vlog2.f32 %v308_v19 }
 0x233   :  { %v313_v20 = vpop.xlane.xlu1 %312 }
 0x234   :  { %425 = vlog2.f32 %v313_v20 }
 0x23d   :  { %v424_v21 = vpop.eup %423 }
 0x23e   :  { %v315_v22 = vmul.f32 0.6931472, %v424_v21 }
 0x240   :  { %v318_v23 = vsub.f32 %v280_v52, %v315_v22  ;;  %v319_v24 = vsub.f32 %v281_v53, %v315_v22  ;;  %v320_v25 = vsub.f32 %v282_v54, %v315_v22  ;;  %v321_v26 = vsub.f32 %v283_v55, %v315_v22 }
 0x241   :  { %v426_v27 = vpop.eup %425 }
 0x242   :  { %326 = vst [vmem:[#allocation8] sm:$0xff] %v318_v23  ;;  %327 = vst [vmem:[#allocation8 + $0x8] sm:$0xff] %v319_v24  ;;  %v317_v28 = vmul.f32 0.6931472, %v426_v27 }
 0x243   :  { %328 = vst [vmem:[#allocation8 + $0x10] sm:$0xff] %v320_v25  ;;  %329 = vst [vmem:[#allocation8 + $0x18] sm:$0xff] %v321_v26 }
 0x244   :  { %v322_v29 = vsub.f32 %v284_v61, %v317_v28  ;;  %v323_v30 = vsub.f32 %v285_v62, %v317_v28  ;;  %v324_v31 = vsub.f32 %v286_v63, %v317_v28  ;;  %v325_v32 = vsub.f32 %v287_v0, %v317_v28 }
 0x246   :  { %330 = vst [vmem:[#allocation8 + $0x20] sm:$0xff] %v322_v29  ;;  %331 = vst [vmem:[#allocation8 + $0x28] sm:$0xff] %v323_v30 }
 0x247   :  { %332 = vst [vmem:[#allocation8 + $0x30] sm:$0xff] %v324_v31  ;;  %333 = vst [vmem:[#allocation8 + $0x38] sm:$0xff] %v325_v32 }
 0x248   :  { %498 = shalt.err (!%p495_p5)
}
 0x249   :  { %s522_s4 = smov 512   ;;  %s523_s5 = smov 32  }
 0x24a   :  { %345 = dma.vmem_to_hbm [thread:$0]  %s340_s2, 1024, %s559_s3, [#allocation4], %s522_s4, %s522_s4, %s523_s5  }
 0x24b   :  { %511 = dma.done.wait [#allocation4], 1024  }
 0x24c   :  { %512 = vsyncadd [#allocation4], 4294966272 }
 0x24d   :  { %349 = vsyncpa [#allocation3], 1 }
 0x24e   :  { %350 = vsyncpa [#allocation6], 1 }
 0x24f   :  { %351 = vsyncpa [#allocation4], 1 }

// kernel: tpu_custom_call.1
= control target key start
LH: loop header
LB: loop body
LE: loop exit
PB: predicated region body
PF: predicated region fallthrough
CT: control target
= control target key end

     0   :  { %10 = vsyncpa [#allocation5], 0  ;;  %s679_s0 = inlined_call_operand.hbm [shape: bf16[16,64], index: 0, kind: input, shape index: {}]   ;;  %s680_s1 = inlined_call_operand.hbm [shape: bf16[64,512], index: 1, kind: input, shape index: {}]   ;;  %s681_s2 = inlined_call_operand.hbm [shape: f32[1,512], index: 2, kind: input, shape index: {}]   ;;  %s682_s3 = inlined_call_operand.hbm [shape: bf16[16,512], index: 3, kind: output, shape index: {0}]   ;;  %s683_s4 = inlined_call_operand.vmem [shape: f32[16,1], index: 4, kind: output, shape index: {1}]  }
   0x1   :  { %11 = vsyncpa [#allocation8], 0 }
   0x2   :  { %12 = vsyncpa [#allocation6], 0  ;;  %s596_s15 = smov [#allocation7]  }
   0x3   :  { %s30_s16 = sshll.u32 %s596_s15, 4  ;;  %s31_s16 = int_to_ptr.vmem [resolvable:$true] %s30_s16 }
   0x4   :  { %s518_s17 = scalar_lea.vmem %s31_s16, 2048  ;;  %p523_p1 = scmp.lt.s32.totalorder %s31_s16, %s31_s16 }
   0x5   :  { %p519_p0 = scmp.ne.s32.totalorder %s31_s16, %s518_s17  ;;  %p524_p2 = scmp.lt.s32.totalorder %s518_s17, %s518_s17 }
   0x7   :  { %p525_p3 = por %p524_p2, %p523_p1 }
   0x9   :  { %p526_p4 = pnand %p525_p3, %p519_p0 }
   0xb   :  { %529 = shalt.err (!%p526_p4)
}
   0xc   :  { %s597_s18 = smov 256   ;;  %s598_s19 = smov 16  }
   0xd   :  { %36 = dma.hbm_to_vmem [thread:$0]  %s680_s1, 2048, %s31_s16, [#allocation8], %s597_s18, %s597_s18, %s598_s19  }
   0xe   :  { %s599_s22 = smov [#allocation4]  }
   0xf   :  { %s18_s23 = sshll.u32 %s599_s22, 4  ;;  %s19_s23 = int_to_ptr.vmem [resolvable:$true] %s18_s23 }
  0x10   :  { %s538_s24 = scalar_lea.vmem %s19_s23, 128  ;;  %p543_p6 = scmp.lt.s32.totalorder %s19_s23, %s19_s23 }
  0x11   :  { %p539_p5 = scmp.ne.s32.totalorder %s19_s23, %s538_s24  ;;  %p544_p7 = scmp.lt.s32.totalorder %s538_s24, %s538_s24 }
  0x13   :  { %p545_p8 = por %p544_p7, %p543_p6 }
  0x15   :  { %p546_p9 = pnand %p545_p8, %p539_p5 }
  0x17   :  { %549 = shalt.err (!%p546_p9)
}
  0x18   :  { %s600_s25 = smov 64   ;;  %s601_s26 = smov 4  }
  0x19   :  { %24 = dma.hbm_to_vmem [thread:$0]  %s679_s0, 128, %s19_s23, [#allocation5], %s600_s25, %s600_s25, %s601_s26  }
  0x1a   :  { %s602_s29 = smov [#allocation9]  }
  0x1b   :  { %s43_s30 = sshll.u32 %s602_s29, 4  ;;  %s44_s30 = int_to_ptr.vmem [resolvable:$true] %s43_s30 }
  0x1c   :  { %s558_s1 = scalar_lea.vmem %s44_s30, 64  ;;  %p563_p11 = scmp.lt.s32.totalorder %s44_s30, %s44_s30 }
  0x1d   :  { %p559_p10 = scmp.ne.s32.totalorder %s44_s30, %s558_s1  ;;  %p564_p12 = scmp.lt.s32.totalorder %s558_s1, %s558_s1 }
  0x1f   :  { %p565_p13 = por %p564_p12, %p563_p11 }
  0x21   :  { %p566_p0 = pnand %p565_p13, %p559_p10 }
  0x23   :  { %569 = shalt.err (!%p566_p0)
}
  0x24   :  { %46 = dma.hbm_to_vmem [thread:$0]  %s681_s2, 64, %s44_s30, [#allocation8]  }
  0x25   :  { %590 = dma.done.wait [#allocation5], 128  }
  0x26   :  { %591 = vsyncadd [#allocation5], 4294967168 }
  0x27   :  { %592 = dma.done.wait [#allocation8], 2112  }
  0x28   :  { %593 = vsyncadd [#allocation8], 4294965184  ;;  %v603_v0 = vmov 0   ;;  %v461_v1 = vld [vmem:[#allocation7 + $0x64] ss:$16 sps:$4 sm:$0xff]   ;;  %v485_v17 = vld [vmem:[#allocation4] sm:$0xff]   ;;  %v86_v19 = vlaneseq }
  0x29   :  { %227 = vmatprep.mubr.bf16.mxu0 %v603_v0  ;;  %270 = vmatprep.mubr.bf16.mxu1 %v603_v0  ;;  %v463_v2 = vld [vmem:[#allocation7 + $0x6c] ss:$16 sps:$4 sm:$0xff]   ;;  %v465_v3 = vld [vmem:[#allocation7 + $0x60] ss:$16 sps:$4 sm:$0xff]   ;;  %v466_v4 = vld [vmem:[#allocation7 + $0x68] ss:$16 sps:$4 sm:$0xff]  }
  0x2a   :  { %459 = vset.pattern.permute.xlu1 %v603_v0  ;;  %460 = vset.pattern.permute.xlu0 %v603_v0  ;;  %v467_v5 = vld [vmem:[#allocation7 + $0x44] ss:$16 sps:$4 sm:$0xff]   ;;  %v469_v6 = vld [vmem:[#allocation7 + $0x4c] ss:$16 sps:$4 sm:$0xff]   ;;  %v471_v7 = vld [vmem:[#allocation7 + $0x40] ss:$16 sps:$4 sm:$0xff]  }
  0x2b   :  { %203 = vmatprep.subr.bf16.mxu0 %v461_v1  ;;  %246 = vmatprep.subr.bf16.mxu1 %v463_v2  ;;  %v472_v8 = vld [vmem:[#allocation7 + $0x48] ss:$16 sps:$4 sm:$0xff]   ;;  %v473_v9 = vld [vmem:[#allocation7 + $0x24] ss:$16 sps:$4 sm:$0xff]   ;;  %v475_v10 = vld [vmem:[#allocation7 + $0x2c] ss:$16 sps:$4 sm:$0xff]  }
  0x2c   :  { %204 = vmatpush1.bf16.msra.mxu0 %v465_v3  ;;  %247 = vmatpush1.bf16.msra.mxu1 %v466_v4  ;;  %v477_v11 = vld [vmem:[#allocation7 + $0x20] ss:$16 sps:$4 sm:$0xff]   ;;  %v478_v12 = vld [vmem:[#allocation7 + $0x28] ss:$16 sps:$4 sm:$0xff]   ;;  %v479_v13 = vld [vmem:[#allocation7 + $0x4] ss:$16 sps:$4 sm:$0xff]  }
  0x2d   :  { %205 = vmatprep.subr.bf16.mxu0 %v467_v5  ;;  %248 = vmatprep.subr.bf16.mxu1 %v469_v6  ;;  %v481_v14 = vld [vmem:[#allocation7 + $0xc] ss:$16 sps:$4 sm:$0xff]   ;;  %v483_v15 = vld [vmem:[#allocation7] ss:$16 sps:$4 sm:$0xff]   ;;  %v484_v16 = vld [vmem:[#allocation7 + $0x8] ss:$16 sps:$4 sm:$0xff]  }
  0x2e   :  { %vm191_vm0 = vcmask 523264   ;;  %vm61_vm1 = vcmask 7168   ;;  %v604_v18 = vmov -inf   ;;  %v87_v20 = vshrl.u32 %v86_v19, 7  ;;  %v84_v23 = vld [vmem:[#allocation9] sm:$0xf] }
  0x2f   :  { %62 = vst.msk [vmem:[#allocation2] sm:$0xff] %vm61_vm1, %v604_v18  ;;  %63 = vst.msk [vmem:[#allocation2 + $0x8] sm:$0xff] %vm61_vm1, %v604_v18  ;;  %v605_v56 = vmov 0.0   ;;  %s606_s0 = smov [#allocation10]  }
  0x30   :  { %206 = vmatpush1.bf16.msra.mxu0 %v471_v7  ;;  %249 = vmatpush1.bf16.msra.mxu1 %v472_v8  ;;  %v88_v21 = vsub.s32 0, %v87_v20  ;;  %v96_v22 = vsub.s32 2, %v87_v20  ;;  %v92_v24 = vsub.s32 1, %v87_v20  ;;  %v100_v25 = vsub.s32 3, %v87_v20  ;;  %64 = vst.msk [vmem:[#allocation3] sm:$0xff] %vm61_vm1, %v605_v56  ;;  %65 = vst.msk [vmem:[#allocation3 + $0x8] sm:$0xff] %vm61_vm1, %v605_v56 }
  0x31   :  { %207 = vmatprep.subr.bf16.mxu0 %v473_v9  ;;  %250 = vmatprep.subr.bf16.mxu1 %v475_v10  ;;  %s404_s2 = sshll.u32 %s606_s0, 4  ;;  %s405_s2 = int_to_ptr.vmem [resolvable:$true] %s404_s2 }
  0x32   :  { %v89_v26 = vrot.slane %v84_v23, %v88_v21  ;;  %v97_v27 = vrot.slane %v84_v23, %v96_v22  ;;  %v93_v28 = vrot.slane %v84_v23, %v92_v24  ;;  %v101_v29 = vrot.slane %v84_v23, %v100_v25  ;;  %s570_s7 = scalar_lea.vmem %s405_s2, 512  ;;  %p575_p2 = scmp.lt.s32.totalorder %s405_s2, %s405_s2 }
  0x33   :  { %p571_p1 = scmp.ne.s32.totalorder %s405_s2, %s570_s7  ;;  %p576_p3 = scmp.lt.s32.totalorder %s570_s7, %s570_s7 }
  0x34   :  { %208 = vmatpush1.bf16.msra.mxu0 %v477_v11  ;;  %251 = vmatpush1.bf16.msra.mxu1 %v478_v12 }
  0x35   :  { %209 = vmatprep.subr.bf16.mxu0 %v479_v13  ;;  %252 = vmatprep.subr.bf16.mxu1 %v481_v14  ;;  %p577_p4 = por %p576_p3, %p575_p2 }
  0x36   :  { %v648_v57 = vld [vmem:[#allocation2] sm:$0xff]  ;;  %v653_v60 = vld [vmem:[#allocation2 + $0x8] sm:$0xff] }
  0x37   :  { %p578_p5 = pnand %p577_p4, %p571_p1 }
  0x38   :  { %210 = vmatpush1.bf16.msra.mxu0 %v483_v15  ;;  %253 = vmatpush1.bf16.msra.mxu1 %v484_v16 }
  0x3b   :  { %438 = vmatmul.mubr.msk.bf16.vlgmr.msra.gmra.mxu0 %vm191_vm0, %v485_v17  ;;  %439 = vmatmul.mubr.msk.bf16.vlgmr.msra.gmra.mxu1 %vm191_vm0, %v485_v17 }
  0xfb   :  { %v229_v30 = vpop.f32.mrf.mxu0  ;;  %v272_v31 = vpop.f32.mrf.mxu1 }
  0xfc   :  { %v230_v32 = vadd.f32 %v229_v30, %v89_v26  ;;  %v273_v33 = vadd.f32 %v272_v31, %v97_v27 }
  0xfd   :  { %v231_v34 = vpop.f32.mrf.mxu0  ;;  %v274_v35 = vpop.f32.mrf.mxu1 }
  0xfe   :  { %v232_v36 = vadd.f32 %v231_v34, %v93_v28  ;;  %v275_v37 = vadd.f32 %v274_v35, %v101_v29  ;;  %v311_v46 = vmax.f32 %v230_v32, %v273_v33 }
  0xff   :  { %v233_v38 = vpop.f32.mrf.mxu0  ;;  %v276_v39 = vpop.f32.mrf.mxu1 }
 0x100   :  { %v444_v40 = vpack.c.bf16 %v232_v36, %v230_v32  ;;  %v445_v41 = vpack.c.bf16 %v275_v37, %v273_v33  ;;  %v234_v42 = vadd.f32 %v233_v38, %v89_v26  ;;  %v277_v43 = vadd.f32 %v276_v39, %v97_v27 }
 0x101   :  { %v235_v44 = vpop.f32.mrf.mxu0  ;;  %v278_v45 = vpop.f32.mrf.mxu1  ;;  %v312_v47 = vmax.f32 %v232_v36, %v275_v37 }
 0x102   :  { %305 = vst [vmem:[#allocation10] sm:$0xff] %v444_v40  ;;  %306 = vst [vmem:[#allocation10 + $0x8] sm:$0xff] %v445_v41  ;;  %v236_v48 = vadd.f32 %v235_v44, %v93_v28  ;;  %v279_v49 = vadd.f32 %v278_v45, %v101_v29  ;;  %v316_v53 = vmax.f32 %v234_v42, %v277_v43 }
 0x103   :  { %v313_v50 = vmax.f32 %v311_v46, %v312_v47 }
 0x104   :  { %v446_v51 = vpack.c.bf16 %v236_v48, %v234_v42  ;;  %v447_v52 = vpack.c.bf16 %v279_v49, %v277_v43  ;;  %v317_v54 = vmax.f32 %v236_v48, %v279_v49 }
 0x105   :  { %314 = vmax.xlane.f32.xlu0 %v313_v50 }
 0x106   :  { %307 = vst [vmem:[#allocation10 + $0x10] sm:$0xff] %v446_v51  ;;  %308 = vst [vmem:[#allocation10 + $0x18] sm:$0xff] %v447_v52  ;;  %v318_v55 = vmax.f32 %v316_v53, %v317_v54 }
 0x109   :  { %319 = vmax.xlane.f32.xlu0 %v318_v55 }
 0x18e   :  { %v315_v58 = vpop.xlane.xlu0 %314 }
 0x18f   :  { %v651_v59 = vmax.f32 %v648_v57, %v315_v58 }
 0x191   :  { %v323_v61 = vsub.f32 %v648_v57, %v651_v59  ;;  %382 = vst.msk [vmem:[#allocation2] sm:$0xff] %vm61_vm1, %v651_v59  ;;  %335 = vperm.xlu1 %459, %v651_v59  }
 0x192   :  { %v320_v62 = vpop.xlane.xlu0 %319 }
 0x193   :  { %v322_v63 = vmax.f32 %v653_v60, %v320_v62 }
 0x195   :  { %v324_v0 = vsub.f32 %v653_v60, %v322_v63  ;;  %383 = vst.msk [vmem:[#allocation2 + $0x8] sm:$0xff] %vm61_vm1, %v322_v63  ;;  %340 = vperm.xlu1 %459, %v322_v63  }
 0x20c   :  { %v336_v1 = vpop.permute.xlu1 %335 }
 0x20d   :  { %v343_v2 = vsub.f32 %v230_v32, %v336_v1  ;;  %v344_v3 = vsub.f32 %v232_v36, %v336_v1  ;;  %v345_v4 = vsub.f32 %v273_v33, %v336_v1  ;;  %v346_v5 = vsub.f32 %v275_v37, %v336_v1 }
 0x20f   :  { %v351_v6 = vmul.f32 1.442695, %v343_v2  ;;  %v353_v7 = vmul.f32 1.442695, %v344_v3  ;;  %v355_v8 = vmul.f32 1.442695, %v345_v4 }
 0x210   :  { %v357_v9 = vmul.f32 1.442695, %v346_v5  ;;  %v341_v10 = vpop.permute.xlu1 %340 }
 0x211   :  { %486 = vpow2.f32 %v351_v6  ;;  %v347_v11 = vsub.f32 %v234_v42, %v341_v10  ;;  %v348_v12 = vsub.f32 %v236_v48, %v341_v10  ;;  %v349_v13 = vsub.f32 %v277_v43, %v341_v10 }
 0x212   :  { %488 = vpow2.f32 %v353_v7  ;;  %v350_v14 = vsub.f32 %v279_v49, %v341_v10 }
 0x213   :  { %490 = vpow2.f32 %v355_v8  ;;  %v359_v15 = vmul.f32 1.442695, %v347_v11  ;;  %v361_v16 = vmul.f32 1.442695, %v348_v12  ;;  %v363_v17 = vmul.f32 1.442695, %v349_v13 }
 0x214   :  { %492 = vpow2.f32 %v357_v9  ;;  %v365_v18 = vmul.f32 1.442695, %v350_v14 }
 0x215   :  { %494 = vpow2.f32 %v359_v15 }
 0x216   :  { %496 = vpow2.f32 %v361_v16 }
 0x217   :  { %498 = vpow2.f32 %v363_v17 }
 0x218   :  { %500 = vpow2.f32 %v365_v18 }
 0x21e   :  { %v487_v19 = vpop.eup %486 }
 0x21f   :  { %v489_v20 = vpop.eup %488 }
 0x220   :  { %v491_v21 = vpop.eup %490  ;;  %v367_v22 = vadd.f32 %v489_v20, %v487_v19 }
 0x221   :  { %v493_v23 = vpop.eup %492 }
 0x222   :  { %v495_v24 = vpop.eup %494  ;;  %v368_v25 = vadd.f32 %v491_v21, %v367_v22 }
 0x223   :  { %v497_v26 = vpop.eup %496 }
 0x224   :  { %v369_v27 = vadd.f32 %v493_v23, %v368_v25  ;;  %v372_v28 = vadd.f32 %v497_v26, %v495_v24  ;;  %v499_v29 = vpop.eup %498 }
 0x225   :  { %v501_v31 = vpop.eup %500 }
 0x226   :  { %370 = vadd.xlane.f32.xlu0 %v369_v27  ;;  %v373_v30 = vadd.f32 %v499_v29, %v372_v28 }
 0x228   :  { %v374_v32 = vadd.f32 %v501_v31, %v373_v30 }
 0x22a   :  { %375 = vadd.xlane.f32.xlu1 %v374_v32 }
 0x22b   :  { %581 = shalt.err (!%p578_p5)
}
 0x22c   :  { %410 = dma.vmem_to_hbm [thread:$0]  %s405_s2, 512, %s682_s3, [#allocation6], %s597_s18, %s597_s18, %s598_s19   ;;  %v325_v33 = vmul.f32 1.442695, %v323_v61  ;;  %v327_v34 = vmul.f32 1.442695, %v324_v0 }
 0x22d   :  { %v329_v36 = vld [vmem:[#allocation3] sm:$0xff]  ;;  %v330_v40 = vld [vmem:[#allocation3 + $0x8] sm:$0xff]  ;;  %v387_v49 = vld [vmem:[#allocation2] sm:$0xff] }
 0x22e   :  { %502 = vpow2.f32 %v325_v33  ;;  %v388_v53 = vld [vmem:[#allocation2 + $0x8] sm:$0xff] }
 0x22f   :  { %504 = vpow2.f32 %v327_v34 }
 0x23b   :  { %v503_v35 = vpop.eup %502 }
 0x23c   :  { %v331_v37 = vmul.f32 %v503_v35, %v329_v36  ;;  %v505_v38 = vpop.eup %504 }
 0x23d   :  { %v332_v42 = vmul.f32 %v505_v38, %v330_v40 }
 0x2af   :  { %v371_v39 = vpop.xlane.xlu0 %370 }
 0x2b0   :  { %v377_v41 = vadd.f32 %v371_v39, %v331_v37 }
 0x2b2   :  { %380 = vst.msk [vmem:[#allocation3] sm:$0xff] %vm61_vm1, %v377_v41 }
 0x2b3   :  { %v376_v43 = vpop.xlane.xlu1 %375 }
 0x2b4   :  { %v378_v44 = vadd.f32 %v376_v43, %v332_v42 }
 0x2b6   :  { %381 = vst.msk [vmem:[#allocation3 + $0x8] sm:$0xff] %vm61_vm1, %v378_v44 }
 0x2b9   :  { %v389_v45 = vld [vmem:[#allocation3] sm:$0xff] }
 0x2ba   :  { %506 = vlog2.f32 %v389_v45 }
 0x2bd   :  { %v390_v46 = vld [vmem:[#allocation3 + $0x8] sm:$0xff] }
 0x2be   :  { %508 = vlog2.f32 %v390_v46 }
 0x2c7   :  { %v507_v47 = vpop.eup %506 }
 0x2c8   :  { %v392_v48 = vmul.f32 0.6931472, %v507_v47 }
 0x2ca   :  { %v395_v50 = vadd.f32 %v392_v48, %v387_v49 }
 0x2cb   :  { %v509_v51 = vpop.eup %508 }
 0x2cc   :  { %397 = vst.msk [vmem:[%s683_s4] sm:$0xff] %vm61_vm1, %v395_v50  ;;  %v394_v52 = vmul.f32 0.6931472, %v509_v51 }
 0x2ce   :  { %v396_v54 = vadd.f32 %v394_v52, %v388_v53 }
 0x2d0   :  { %398 = vst.msk [vmem:[%s683_s4 + $0x8] sm:$0xff] %vm61_vm1, %v396_v54 }
 0x2d1   :  { %594 = dma.done.wait [#allocation6], 512  }
 0x2d2   :  { %595 = vsyncadd [#allocation6], 4294966784 }
 0x2d3   :  { %418 = vsyncpa [#allocation5], 1 }
 0x2d4   :  { %419 = vsyncpa [#allocation8], 1 }
 0x2d5   :  { %420 = vsyncpa [#allocation6], 1 }

</bundles_post_ra>
